<compile_context>
chip_gen: v7x
topology: tpu7x:2x2x1
jax: 0.10.0
libtpu: 0.0.40
codegen_flags: <defaults>
</compile_context>

<pallas_src>
import math
import functools

import jax
import jax.numpy as jnp
from jax import lax
from jax.experimental import pallas as pl
from jax.experimental.pallas import tpu as pltpu


def _center_loss_kernel(x_ref, labels_ref, centers_hbm, out_ref,
                        c_vmem, c_sem, cnorm_scr, rep_scr, attr_vec,
                        counts_acc, sums_acc, term1_acc,
                        *, min_distance, repulsion_strength, batch_size,
                        num_classes):
    i = pl.program_id(0)
    nb = pl.num_programs(0)
    C = c_vmem.shape[0]
    TB = x_ref.shape[0]

    @pl.when(i == 0)
    def _init():
        # Copy the constant centers HBM -> VMEM exactly once (single resident
        # copy; avoids the VMEM a default double-buffered BlockSpec would burn
        # on an operand whose index_map never changes).
        cp = pltpu.make_async_copy(centers_hbm, c_vmem, c_sem)
        cp.start()
        cp.wait()
        c = c_vmem[...]                                            # (C, D)

        # Hoisted ||center||^2 — reused by every grid step and the finalize.
        c_norm = jnp.sum(c * c, axis=1, keepdims=True)             # (C, 1)
        cnorm_scr[...] = c_norm

        # Batch-independent centers<->centers repulsion, computed once here so
        # it hides under the pipeline fill instead of serializing the tail.
        cc = lax.dot_general(c, c, (((1,), (1,)), ((), ())),
                             preferred_element_type=jnp.float32)   # (C, C)
        cdist = jnp.sqrt(jnp.maximum(
            c_norm + jnp.transpose(c_norm) - 2.0 * cc, 1e-12))
        eye = (lax.broadcasted_iota(jnp.int32, (C, C), 0) ==
               lax.broadcasted_iota(jnp.int32, (C, C), 1)).astype(jnp.float32)
        rep_scr[0] = (jnp.sum(jnp.maximum(min_distance - cdist, 0.0)
                              * (1.0 - eye))
                      / (num_classes * (num_classes - 1) + 1e-6))

        # Zero the streaming accumulators.
        attr_vec[...] = jnp.zeros_like(attr_vec)
        counts_acc[...] = jnp.zeros_like(counts_acc)
        sums_acc[...] = jnp.zeros_like(sums_acc)
        term1_acc[...] = jnp.zeros_like(term1_acc)

    x = x_ref[...]                         # (TB, D) f32
    labels = labels_ref[...]               # (1, TB) i32, lane-dense
    c = c_vmem[...]                        # (C, D)  resident centers

    # Transposed (C, TB) distance matrix: per-row quantities stay lane-dense.
    x_norm_t = jnp.transpose(jnp.sum(x * x, axis=1, keepdims=True))    # (1, TB)
    xc_t = lax.dot_general(c, x, (((1,), (1,)), ((), ())),
                           preferred_element_type=jnp.float32)         # (C, TB)
    dist2_t = jnp.maximum(cnorm_scr[...] + x_norm_t - 2.0 * xc_t, 1e-12)

    class_ids = lax.broadcasted_iota(jnp.int32, (C, TB), 0)
    mask_t = (labels == class_ids).astype(jnp.float32)                 # (C, TB)
    md = mask_t * dist2_t                                              # (C, TB)

    # Attraction: exactly one mask entry per real row, so
    # sum_c mask*sqrt(d2) == sqrt(sum_c mask*d2); padded rows (label == C)
    # have an all-zero mask column and contribute exactly 0.
    attr_vec[...] += jnp.sqrt(jnp.sum(md, axis=0, keepdims=True))      # (1, TB)

    # Per-class streaming statistics for the intra-class variance term.
    counts_acc[...] += jnp.sum(mask_t, axis=1, keepdims=True)          # (C, 1)
    term1_acc[...] += jnp.sum(md, axis=1, keepdims=True)               # (C, 1)
    sums_acc[...] += lax.dot_general(mask_t, x, (((1,), (0,)), ((), ())),
                                     preferred_element_type=jnp.float32)  # (C, D)

    @pl.when(i == nb - 1)
    def _finalize():
        counts = counts_acc[...]                               # (C, 1)
        safe = jnp.maximum(counts, 1.0)
        mu = sums_acc[...] / safe                              # (C, D) class means
        diff = mu - c_vmem[...]
        shift_sq = jnp.sum(diff * diff, axis=1, keepdims=True)   # (C, 1)
        # sum_i ||x_i - mu_c||^2 = sum_i ||x_i - r_c||^2 - n_c*||mu_c - r_c||^2
        # (r_c = parameter center; clamp guards residual f32 cancellation).
        var_sum = jnp.maximum(term1_acc[...] - counts * shift_sq, 0.0)
        variance = jnp.where(counts > 1.0, var_sum / safe, 0.0)
        intra = jnp.sum(variance) / num_classes

        attraction = jnp.sum(attr_vec[...]) / batch_size
        out_ref[0] = (attraction
                      + repulsion_strength * rep_scr[0]
                      - 0.1 * intra)


def center_loss(x, centers, labels, *, min_distance=1.0, repulsion_strength=1.0,
                block_b=None, vmem_cap_bytes=48 * 1024 * 1024):
    x = x.astype(jnp.float32)
    centers = centers.astype(jnp.float32)
    labels = labels.astype(jnp.int32)
    B, D = x.shape
    C = centers.shape[0]

    # Pad the feature dim to a lane multiple (zero columns are exact no-ops for
    # every term); keeps MXU tiles dense, e.g. on v5e's 128-wide MXU.
    D_pad = max(128, ((D + 127) // 128) * 128)
    if D_pad != D:
        x = jnp.pad(x, ((0, 0), (0, D_pad - D)))
        centers = jnp.pad(centers, ((0, 0), (0, D_pad - D)))

    # --- batch-tile selection (biggest lever: few grid steps, big tiles) ----
    # Explicit VMEM budget (48 MiB cap keeps the same sizing valid on v7x's
    # 64 MiB VMEM as well as v5e/v6e's 128 MiB; well above v5e's 16 MiB
    # scoped default, hence the explicit vmem_limit_bytes below):
    #   2*TB*D*4  x tile (double-buffered)  +  2*TB*4  labels tile
    # + 2*C*D*4   resident centers copy + per-class feature-sum accumulator
    # + ~1 MiB    small accumulators / slack
    fixed_bytes = 2 * C * D_pad * 4 + (1 << 20)
    tb_budget = max(128, (vmem_cap_bytes - fixed_bytes) // (2 * (D_pad + 1) * 4))
    target = min(int(block_b), tb_budget) if block_b is not None \
        else min(1024, tb_budget)

    B8 = max(8, ((B + 7) // 8) * 8)
    if B8 <= max(target, 8):
        TB, nb = B8, 1                        # whole batch in one grid step
    else:
        TB = max(128, (target // 128) * 128)  # keep labels' lane dim 128-aligned
        nb = (B + TB - 1) // TB
    B_pad = nb * TB

    if B_pad != B:
        # Padded rows carry label == C (matches no class): they contribute
        # exactly zero to attraction, counts, sums and term1.
        x = jnp.pad(x, ((0, B_pad - B), (0, 0)))
        labels = jnp.pad(labels, (0, B_pad - B), constant_values=C)
    labels_row = labels.reshape(1, B_pad)      # lane-dense labels layout

    kernel = functools.partial(
        _center_loss_kernel,
        min_distance=float(min_distance),
        repulsion_strength=float(repulsion_strength),
        batch_size=float(B),
        num_classes=C)

    out = pl.pallas_call(
        kernel,
        out_shape=jax.ShapeDtypeStruct((1,), jnp.float32),
        grid=(nb,),
        in_specs=[
            pl.BlockSpec((TB, D_pad), lambda i: (i, 0)),   # x: streamed tiles
            pl.BlockSpec((1, TB), lambda i: (0, i)),       # labels: lane-dense
            pl.BlockSpec(memory_space=pl.ANY),             # centers: stay in HBM
        ],
        out_specs=pl.BlockSpec(memory_space=pltpu.MemorySpace.SMEM),
        scratch_shapes=[
            pltpu.VMEM((C, D_pad), jnp.float32),   # resident centers copy
            pltpu.SemaphoreType.DMA,               # centers copy semaphore
            pltpu.VMEM((C, 1), jnp.float32),       # hoisted ||center||^2
            pltpu.SMEM((1,), jnp.float32),         # repulsion (computed at i==0)
            pltpu.VMEM((1, TB), jnp.float32),      # per-lane attraction acc
            pltpu.VMEM((C, 1), jnp.float32),       # per-class counts
            pltpu.VMEM((C, D_pad), jnp.float32),   # per-class feature sums
            pltpu.VMEM((C, 1), jnp.float32),       # per-class sum ||x - r_c||^2
        ],
        compiler_params=pltpu.CompilerParams(
            # Single batch axis carries the accumulators -> reduction axis.
            dimension_semantics=("arbitrary",),
            vmem_limit_bytes=int(vmem_cap_bytes)),
    )(x, labels_row, centers)
    return out[0]


def center_loss_ref(x, centers, labels, *, min_distance=1.0,
                    repulsion_strength=1.0):
    """Pure-JAX reference matching the PyTorch forward exactly."""
    B, D = x.shape
    C = centers.shape[0]

    def pdist(a, b):
        an = jnp.sum(a ** 2, axis=1)[:, None]
        bn = jnp.sum(b ** 2, axis=1)[None, :]
        d = an + bn - 2.0 * jnp.matmul(a, b.T, precision=jax.lax.Precision.HIGHEST)
        return jnp.sqrt(jnp.maximum(d, 1e-12))

    distmat = pdist(x, centers)
    mask = (labels[:, None] == jnp.arange(C)[None, :]).astype(jnp.float32)
    attraction = jnp.sum(distmat * mask) / B

    cdist = pdist(centers, centers)
    diff_mask = 1.0 - jnp.eye(C)
    repulsion = (jnp.sum(jnp.maximum(min_distance - cdist, 0.0) * diff_mask)
                 / (C * (C - 1) + 1e-6))

    intra = 0.0
    for c in range(C):
        cm = (labels == c).astype(jnp.float32)
        cnt = jnp.sum(cm)
        center = jnp.sum(x * cm[:, None], axis=0) / jnp.maximum(cnt, 1.0)
        var = (jnp.sum(cm * jnp.sum((x - center) ** 2, axis=1))
               / jnp.maximum(cnt, 1.0))
        intra = intra + jnp.where(cnt > 1, var, 0.0)
    intra = intra / C

    return attraction + repulsion_strength * repulsion - 0.1 * intra


if __name__ == "__main__":
    B, D, C = 64, 256, 2

    key = jax.random.PRNGKey(0)
    kx, kl, kx2, kl2, kc2 = jax.random.split(key, 5)

    # --- Test 1: module defaults (num_classes == 2 deterministic centers);
    #     single-tile path (whole batch in one grid step). ---
    x = jax.random.normal(kx, (B, D), dtype=jnp.float32)
    labels = jax.random.randint(kl, (B,), 0, C, dtype=jnp.int32)
    centers = jnp.stack([
        -jnp.ones((D,), jnp.float32) / math.sqrt(D),
        jnp.ones((D,), jnp.float32) / math.sqrt(D),
    ], axis=0)

    loss = jax.block_until_ready(
        center_loss(x, centers, labels, min_distance=1.0, repulsion_strength=1.0))
    ref = jax.block_until_ready(
        center_loss_ref(x, centers, labels, min_distance=1.0,
                        repulsion_strength=1.0))
    assert jnp.allclose(loss, ref, rtol=1e-4, atol=1e-4), (loss, ref)

    # --- Test 2: multi-step streaming path (nb > 1) with batch padding. ---
    B2, C2 = 500, 4
    x2 = jax.random.normal(kx2, (B2, D), dtype=jnp.float32)
    labels2 = jax.random.randint(kl2, (B2,), 0, C2, dtype=jnp.int32)
    c2 = jax.random.normal(kc2, (C2, D), dtype=jnp.float32)
    c2 = c2 / jnp.linalg.norm(c2, axis=1, keepdims=True) * 2.0

    loss2 = jax.block_until_ready(
        center_loss(x2, c2, labels2, min_distance=1.0, repulsion_strength=1.0,
                    block_b=128))
    ref2 = jax.block_until_ready(
        center_loss_ref(x2, c2, labels2, min_distance=1.0,
                        repulsion_strength=1.0))
    assert jnp.allclose(loss2, ref2, rtol=1e-4, atol=1e-4), (loss2, ref2)

    print("KERNEL_OK")
</pallas_src>

<mosaic_0001>
module attributes {stable_mosaic.version = 11 : i64} {
  func.func @_center_loss_kernel(%arg0: i32, %arg1: memref<64x256xf32, #tpu.memory_space<vmem>>, %arg2: memref<1x64xi32, #tpu.memory_space<vmem>>, %arg3: memref<2x256xf32, #tpu.memory_space<any>>, %arg4: memref<1xf32, #tpu.memory_space<smem>>, %arg5: memref<2x256xf32, #tpu.memory_space<vmem>>, %arg6: memref<!tpu.dma_semaphore, #tpu.memory_space<semaphore_mem>>, %arg7: memref<2x1xf32, #tpu.memory_space<vmem>>, %arg8: memref<1xf32, #tpu.memory_space<smem>>, %arg9: memref<1x64xf32, #tpu.memory_space<vmem>>, %arg10: memref<2x1xf32, #tpu.memory_space<vmem>>, %arg11: memref<2x256xf32, #tpu.memory_space<vmem>>, %arg12: memref<2x1xf32, #tpu.memory_space<vmem>>) attributes {dimension_semantics = [#tpu.dimension_semantics<arbitrary>], iteration_bounds = array<i64: 1>, scalar_prefetch = 0 : i64, scratch_operands = 8 : i64, tpu.core_type = #tpu.core_type<tc>, window_params = [{transform_indices = @transform_0, window_bounds = array<i64: 64, 256>}, {transform_indices = @transform_1, window_bounds = array<i64: 1, 64>}, {}, {transform_indices = @transform_3, window_bounds = array<i64: 1>}]} {
    %c0_i32 = arith.constant 0 : i32
    %0 = arith.cmpi eq, %arg0, %c0_i32 : i32
    %1 = arith.extui %0 : i1 to i32
    %c0_i32_0 = arith.constant 0 : i32
    %2 = arith.cmpi ne, %1, %c0_i32_0 : i32
    scf.if %2 {
      tpu.enqueue_dma source(%arg3 : memref<2x256xf32, #tpu.memory_space<any>>) target(%arg5 : memref<2x256xf32, #tpu.memory_space<vmem>>) target_semaphore(%arg6 : memref<!tpu.dma_semaphore, #tpu.memory_space<semaphore_mem>>)
      tpu.wait_dma2 semaphore(%arg6 : memref<!tpu.dma_semaphore, #tpu.memory_space<semaphore_mem>>) src(%arg3 : memref<2x256xf32, #tpu.memory_space<any>>) dst(%arg5 : memref<2x256xf32, #tpu.memory_space<vmem>>)
      %c0_33 = arith.constant 0 : index
      %c0_34 = arith.constant 0 : index
      %49 = vector.load %arg5[%c0_33, %c0_34] : memref<2x256xf32, #tpu.memory_space<vmem>>, vector<2x256xf32>
      %50 = arith.mulf %49, %49 : vector<2x256xf32>
      %cst_35 = arith.constant dense<0.000000e+00> : vector<2xf32>
      %51 = vector.multi_reduction <add>, %50, %cst_35 [1] : vector<2x256xf32> to vector<2xf32>
      %52 = vector.shape_cast %51 : vector<2xf32> to vector<2x1xf32>
      %c0_36 = arith.constant 0 : index
      %c0_37 = arith.constant 0 : index
      %53 = vector.load %arg7[%c0_36, %c0_37] : memref<2x1xf32, #tpu.memory_space<vmem>>, vector<2x1xf32>
      tpu.vector_store %arg7[%c0_36, %c0_37], %52 {strides = array<i32>} : memref<2x1xf32, #tpu.memory_space<vmem>>, vector<2x1xf32>,
      %cst_38 = arith.constant dense<0.000000e+00> : vector<2x2xf32>
      %54 = tpu.matmul %49, %49, %cst_38 {dimension_numbers = #tpu.dot_dimension_numbers<[1], [1], [0], [0], [0, 0, 1, 0], [], []>} : vector<2x256xf32>, vector<2x256xf32>, vector<2x2xf32> -> vector<2x2xf32>
      %55 = tpu.transpose %52, [1, 0] : vector<2x1xf32> -> vector<1x2xf32>
      %56 = vector.broadcast %52 : vector<2x1xf32> to vector<2x2xf32>
      %57 = vector.broadcast %55 : vector<1x2xf32> to vector<2x2xf32>
      %58 = arith.addf %56, %57 : vector<2x2xf32>
      %cst_39 = arith.constant 2.000000e+00 : f32
      %59 = vector.broadcast %cst_39 : f32 to vector<2x2xf32>
      %60 = arith.mulf %59, %54 : vector<2x2xf32>
      %61 = arith.subf %58, %60 : vector<2x2xf32>
      %cst_40 = arith.constant 9.99999996E-13 : f32
      %62 = vector.broadcast %cst_40 : f32 to vector<2x2xf32>
      %63 = arith.maximumf %61, %62 : vector<2x2xf32>
      %64 = math.sqrt %63 : vector<2x2xf32>
      %65 = tpu.iota {dimensions = array<i32: 0>} : vector<2x2xi32>
      %66 = tpu.iota {dimensions = array<i32: 1>} : vector<2x2xi32>
      %67 = arith.cmpi eq, %65, %66 : vector<2x2xi32>
      %68 = arith.extui %67 : vector<2x2xi1> to vector<2x2xi32>
      %69 = arith.sitofp %68 : vector<2x2xi32> to vector<2x2xf32>
      %cst_41 = arith.constant 1.000000e+00 : f32
      %70 = vector.broadcast %cst_41 : f32 to vector<2x2xf32>
      %71 = arith.subf %70, %64 : vector<2x2xf32>
      %cst_42 = arith.constant 0.000000e+00 : f32
      %72 = vector.broadcast %cst_42 : f32 to vector<2x2xf32>
      %73 = arith.maximumf %71, %72 : vector<2x2xf32>
      %cst_43 = arith.constant 1.000000e+00 : f32
      %74 = vector.broadcast %cst_43 : f32 to vector<2x2xf32>
      %75 = arith.subf %74, %69 : vector<2x2xf32>
      %76 = arith.mulf %73, %75 : vector<2x2xf32>
      %77 = vector.shape_cast %76 : vector<2x2xf32> to vector<1x2x2xf32>
      %cst_44 = arith.constant dense<0.000000e+00> : vector<1xf32>
      %78 = vector.multi_reduction <add>, %77, %cst_44 [1, 2] : vector<1x2x2xf32> to vector<1xf32>
      %79 = vector.shape_cast %78 : vector<1xf32> to vector<1x1x1xf32>
      %80 = vector.extract %79[0, 0, 0] : f32 from vector<1x1x1xf32>
      %cst_45 = arith.constant 2.00000095 : f32
      %81 = arith.divf %80, %cst_45 : f32
      %c0_46 = arith.constant 0 : index
      %82 = memref.load %arg8[%c0_46] : memref<1xf32, #tpu.memory_space<smem>>
      memref.store %81, %arg8[%c0_46] : memref<1xf32, #tpu.memory_space<smem>>
      %cst_47 = arith.constant 0.000000e+00 : f32
      %83 = vector.broadcast %cst_47 : f32 to vector<1x64xf32>
      %c0_48 = arith.constant 0 : index
      %c0_49 = arith.constant 0 : index
      %84 = vector.load %arg9[%c0_48, %c0_49] : memref<1x64xf32, #tpu.memory_space<vmem>>, vector<1x64xf32>
      tpu.vector_store %arg9[%c0_48, %c0_49], %83 {strides = array<i32>} : memref<1x64xf32, #tpu.memory_space<vmem>>, vector<1x64xf32>,
      %cst_50 = arith.constant 0.000000e+00 : f32
      %85 = vector.broadcast %cst_50 : f32 to vector<2x1xf32>
      %c0_51 = arith.constant 0 : index
      %c0_52 = arith.constant 0 : index
      %86 = vector.load %arg10[%c0_51, %c0_52] : memref<2x1xf32, #tpu.memory_space<vmem>>, vector<2x1xf32>
      tpu.vector_store %arg10[%c0_51, %c0_52], %85 {strides = array<i32>} : memref<2x1xf32, #tpu.memory_space<vmem>>, vector<2x1xf32>,
      %cst_53 = arith.constant 0.000000e+00 : f32
      %87 = vector.broadcast %cst_53 : f32 to vector<2x256xf32>
      %c0_54 = arith.constant 0 : index
      %c0_55 = arith.constant 0 : index
      %88 = vector.load %arg11[%c0_54, %c0_55] : memref<2x256xf32, #tpu.memory_space<vmem>>, vector<2x256xf32>
      tpu.vector_store %arg11[%c0_54, %c0_55], %87 {strides = array<i32>} : memref<2x256xf32, #tpu.memory_space<vmem>>, vector<2x256xf32>,
      %cst_56 = arith.constant 0.000000e+00 : f32
      %89 = vector.broadcast %cst_56 : f32 to vector<2x1xf32>
      %c0_57 = arith.constant 0 : index
      %c0_58 = arith.constant 0 : index
      %90 = vector.load %arg12[%c0_57, %c0_58] : memref<2x1xf32, #tpu.memory_space<vmem>>, vector<2x1xf32>
      tpu.vector_store %arg12[%c0_57, %c0_58], %89 {strides = array<i32>} : memref<2x1xf32, #tpu.memory_space<vmem>>, vector<2x1xf32>,
    } else {
    }
    %c0 = arith.constant 0 : index
    %c0_1 = arith.constant 0 : index
    %3 = vector.load %arg1[%c0, %c0_1] : memref<64x256xf32, #tpu.memory_space<vmem>>, vector<64x256xf32>
    %c0_2 = arith.constant 0 : index
    %c0_3 = arith.constant 0 : index
    %4 = vector.load %arg2[%c0_2, %c0_3] : memref<1x64xi32, #tpu.memory_space<vmem>>, vector<1x64xi32>
    %c0_4 = arith.constant 0 : index
    %c0_5 = arith.constant 0 : index
    %5 = vector.load %arg5[%c0_4, %c0_5] : memref<2x256xf32, #tpu.memory_space<vmem>>, vector<2x256xf32>
    %6 = arith.mulf %3, %3 : vector<64x256xf32>
    %cst = arith.constant dense<0.000000e+00> : vector<64xf32>
    %7 = vector.multi_reduction <add>, %6, %cst [1] : vector<64x256xf32> to vector<64xf32>
    %8 = vector.shape_cast %7 : vector<64xf32> to vector<64x1xf32>
    %9 = tpu.transpose %8, [1, 0] : vector<64x1xf32> -> vector<1x64xf32>
    %cst_6 = arith.constant dense<0.000000e+00> : vector<2x64xf32>
    %10 = tpu.matmul %5, %3, %cst_6 {dimension_numbers = #tpu.dot_dimension_numbers<[1], [1], [0], [0], [0, 0, 1, 0], [], []>} : vector<2x256xf32>, vector<64x256xf32>, vector<2x64xf32> -> vector<2x64xf32>
    %c0_7 = arith.constant 0 : index
    %c0_8 = arith.constant 0 : index
    %11 = vector.load %arg7[%c0_7, %c0_8] : memref<2x1xf32, #tpu.memory_space<vmem>>, vector<2x1xf32>
    %12 = vector.broadcast %11 : vector<2x1xf32> to vector<2x64xf32>
    %13 = vector.broadcast %9 : vector<1x64xf32> to vector<2x64xf32>
    %14 = arith.addf %12, %13 : vector<2x64xf32>
    %cst_9 = arith.constant 2.000000e+00 : f32
    %15 = vector.broadcast %cst_9 : f32 to vector<2x64xf32>
    %16 = arith.mulf %15, %10 : vector<2x64xf32>
    %17 = arith.subf %14, %16 : vector<2x64xf32>
    %cst_10 = arith.constant 9.99999996E-13 : f32
    %18 = vector.broadcast %cst_10 : f32 to vector<2x64xf32>
    %19 = arith.maximumf %17, %18 : vector<2x64xf32>
    %20 = tpu.iota {dimensions = array<i32: 0>} : vector<2x64xi32>
    %21 = vector.broadcast %4 : vector<1x64xi32> to vector<2x64xi32>
    %22 = arith.cmpi eq, %21, %20 : vector<2x64xi32>
    %23 = arith.extui %22 : vector<2x64xi1> to vector<2x64xi32>
    %24 = arith.sitofp %23 : vector<2x64xi32> to vector<2x64xf32>
    %25 = arith.mulf %24, %19 : vector<2x64xf32>
    %c0_11 = arith.constant 0 : index
    %c0_12 = arith.constant 0 : index
    %26 = vector.load %arg9[%c0_11, %c0_12] : memref<1x64xf32, #tpu.memory_space<vmem>>, vector<1x64xf32>
    %cst_13 = arith.constant dense<0.000000e+00> : vector<64xf32>
    %27 = vector.multi_reduction <add>, %25, %cst_13 [0] : vector<2x64xf32> to vector<64xf32>
    %28 = vector.shape_cast %27 : vector<64xf32> to vector<1x64xf32>
    %29 = math.sqrt %28 : vector<1x64xf32>
    %30 = arith.addf %26, %29 : vector<1x64xf32>
    %c0_14 = arith.constant 0 : index
    %c0_15 = arith.constant 0 : index
    %31 = vector.load %arg9[%c0_14, %c0_15] : memref<1x64xf32, #tpu.memory_space<vmem>>, vector<1x64xf32>
    tpu.vector_store %arg9[%c0_14, %c0_15], %30 {strides = array<i32>} : memref<1x64xf32, #tpu.memory_space<vmem>>, vector<1x64xf32>,
    %c0_16 = arith.constant 0 : index
    %c0_17 = arith.constant 0 : index
    %32 = vector.load %arg10[%c0_16, %c0_17] : memref<2x1xf32, #tpu.memory_space<vmem>>, vector<2x1xf32>
    %cst_18 = arith.constant dense<0.000000e+00> : vector<2xf32>
    %33 = vector.multi_reduction <add>, %24, %cst_18 [1] : vector<2x64xf32> to vector<2xf32>
    %34 = vector.shape_cast %33 : vector<2xf32> to vector<2x1xf32>
    %35 = arith.addf %32, %34 : vector<2x1xf32>
    %c0_19 = arith.constant 0 : index
    %c0_20 = arith.constant 0 : index
    %36 = vector.load %arg10[%c0_19, %c0_20] : memref<2x1xf32, #tpu.memory_space<vmem>>, vector<2x1xf32>
    tpu.vector_store %arg10[%c0_19, %c0_20], %35 {strides = array<i32>} : memref<2x1xf32, #tpu.memory_space<vmem>>, vector<2x1xf32>,
    %c0_21 = arith.constant 0 : index
    %c0_22 = arith.constant 0 : index
    %37 = vector.load %arg12[%c0_21, %c0_22] : memref<2x1xf32, #tpu.memory_space<vmem>>, vector<2x1xf32>
    %cst_23 = arith.constant dense<0.000000e+00> : vector<2xf32>
    %38 = vector.multi_reduction <add>, %25, %cst_23 [1] : vector<2x64xf32> to vector<2xf32>
    %39 = vector.shape_cast %38 : vector<2xf32> to vector<2x1xf32>
    %40 = arith.addf %37, %39 : vector<2x1xf32>
    %c0_24 = arith.constant 0 : index
    %c0_25 = arith.constant 0 : index
    %41 = vector.load %arg12[%c0_24, %c0_25] : memref<2x1xf32, #tpu.memory_space<vmem>>, vector<2x1xf32>
    tpu.vector_store %arg12[%c0_24, %c0_25], %40 {strides = array<i32>} : memref<2x1xf32, #tpu.memory_space<vmem>>, vector<2x1xf32>,
    %c0_26 = arith.constant 0 : index
    %c0_27 = arith.constant 0 : index
    %42 = vector.load %arg11[%c0_26, %c0_27] : memref<2x256xf32, #tpu.memory_space<vmem>>, vector<2x256xf32>
    %cst_28 = arith.constant dense<0.000000e+00> : vector<2x256xf32>
    %43 = tpu.matmul %24, %3, %cst_28 {dimension_numbers = #tpu.dot_dimension_numbers<[1], [0], [0], [1], [0, 0, 1, 1], [], []>} : vector<2x64xf32>, vector<64x256xf32>, vector<2x256xf32> -> vector<2x256xf32>
    %44 = arith.addf %42, %43 : vector<2x256xf32>
    %c0_29 = arith.constant 0 : index
    %c0_30 = arith.constant 0 : index
    %45 = vector.load %arg11[%c0_29, %c0_30] : memref<2x256xf32, #tpu.memory_space<vmem>>, vector<2x256xf32>
    tpu.vector_store %arg11[%c0_29, %c0_30], %44 {strides = array<i32>} : memref<2x256xf32, #tpu.memory_space<vmem>>, vector<2x256xf32>,
    %c0_i32_31 = arith.constant 0 : i32
    %46 = arith.cmpi eq, %arg0, %c0_i32_31 : i32
    %47 = arith.extui %46 : i1 to i32
    %c0_i32_32 = arith.constant 0 : i32
    %48 = arith.cmpi ne, %47, %c0_i32_32 : i32
    scf.if %48 {
      %c0_33 = arith.constant 0 : index
      %c0_34 = arith.constant 0 : index
      %49 = vector.load %arg10[%c0_33, %c0_34] : memref<2x1xf32, #tpu.memory_space<vmem>>, vector<2x1xf32>
      %cst_35 = arith.constant 1.000000e+00 : f32
      %50 = vector.broadcast %cst_35 : f32 to vector<2x1xf32>
      %51 = arith.maximumf %49, %50 : vector<2x1xf32>
      %c0_36 = arith.constant 0 : index
      %c0_37 = arith.constant 0 : index
      %52 = vector.load %arg11[%c0_36, %c0_37] : memref<2x256xf32, #tpu.memory_space<vmem>>, vector<2x256xf32>
      %53 = vector.broadcast %51 : vector<2x1xf32> to vector<2x256xf32>
      %54 = arith.divf %52, %53 : vector<2x256xf32>
      %c0_38 = arith.constant 0 : index
      %c0_39 = arith.constant 0 : index
      %55 = vector.load %arg5[%c0_38, %c0_39] : memref<2x256xf32, #tpu.memory_space<vmem>>, vector<2x256xf32>
      %56 = arith.subf %54, %55 : vector<2x256xf32>
      %57 = arith.mulf %56, %56 : vector<2x256xf32>
      %cst_40 = arith.constant dense<0.000000e+00> : vector<2xf32>
      %58 = vector.multi_reduction <add>, %57, %cst_40 [1] : vector<2x256xf32> to vector<2xf32>
      %59 = vector.shape_cast %58 : vector<2xf32> to vector<2x1xf32>
      %c0_41 = arith.constant 0 : index
      %c0_42 = arith.constant 0 : index
      %60 = vector.load %arg12[%c0_41, %c0_42] : memref<2x1xf32, #tpu.memory_space<vmem>>, vector<2x1xf32>
      %61 = arith.mulf %49, %59 : vector<2x1xf32>
      %62 = arith.subf %60, %61 : vector<2x1xf32>
      %cst_43 = arith.constant 0.000000e+00 : f32
      %63 = vector.broadcast %cst_43 : f32 to vector<2x1xf32>
      %64 = arith.maximumf %62, %63 : vector<2x1xf32>
      %cst_44 = arith.constant 1.000000e+00 : f32
      %65 = vector.broadcast %cst_44 : f32 to vector<2x1xf32>
      %66 = arith.cmpf ogt, %49, %65 : vector<2x1xf32>
      %67 = arith.divf %64, %51 : vector<2x1xf32>
      %cst_45 = arith.constant 0.000000e+00 : f32
      %68 = vector.broadcast %cst_45 : f32 to vector<2x1xf32>
      %69 = arith.select %66, %67, %68 : vector<2x1xi1>, vector<2x1xf32>
      %70 = vector.shape_cast %69 : vector<2x1xf32> to vector<1x2x1xf32>
      %cst_46 = arith.constant dense<0.000000e+00> : vector<1xf32>
      %71 = vector.multi_reduction <add>, %70, %cst_46 [1, 2] : vector<1x2x1xf32> to vector<1xf32>
      %72 = vector.shape_cast %71 : vector<1xf32> to vector<1x1x1xf32>
      %73 = vector.extract %72[0, 0, 0] : f32 from vector<1x1x1xf32>
      %cst_47 = arith.constant 2.000000e+00 : f32
      %74 = arith.divf %73, %cst_47 : f32
      %c0_48 = arith.constant 0 : index
      %c0_49 = arith.constant 0 : index
      %75 = vector.load %arg9[%c0_48, %c0_49] : memref<1x64xf32, #tpu.memory_space<vmem>>, vector<1x64xf32>
      %76 = vector.shape_cast %75 : vector<1x64xf32> to vector<1x1x64xf32>
      %cst_50 = arith.constant dense<0.000000e+00> : vector<1xf32>
      %77 = vector.multi_reduction <add>, %76, %cst_50 [1, 2] : vector<1x1x64xf32> to vector<1xf32>
      %78 = vector.shape_cast %77 : vector<1xf32> to vector<1x1x1xf32>
      %79 = vector.extract %78[0, 0, 0] : f32 from vector<1x1x1xf32>
      %cst_51 = arith.constant 6.400000e+01 : f32
      %80 = arith.divf %79, %cst_51 : f32
      %c0_52 = arith.constant 0 : index
      %81 = memref.load %arg8[%c0_52] : memref<1xf32, #tpu.memory_space<smem>>
      %cst_53 = arith.constant 1.000000e+00 : f32
      %82 = arith.mulf %cst_53, %81 : f32
      %83 = arith.addf %80, %82 : f32
      %cst_54 = arith.constant 1.000000e-01 : f32
      %84 = arith.mulf %cst_54, %74 : f32
      %85 = arith.subf %83, %84 : f32
      %c0_55 = arith.constant 0 : index
      %86 = memref.load %arg4[%c0_55] : memref<1xf32, #tpu.memory_space<smem>>
      memref.store %85, %arg4[%c0_55] : memref<1xf32, #tpu.memory_space<smem>>
    } else {
    }
    return
  }
  func.func @transform_0(%arg0: i32) -> (i32, i32) {
    %c0_i32 = arith.constant 0 : i32
    %c0_i32_0 = arith.constant 0 : i32
    return %arg0, %c0_i32 : i32, i32
  }
  func.func @transform_1(%arg0: i32) -> (i32, i32) {
    %c0_i32 = arith.constant 0 : i32
    %c0_i32_0 = arith.constant 0 : i32
    return %c0_i32, %arg0 : i32, i32
  }
  func.func @transform_3(%arg0: i32) -> i32 {
    %c0_i32 = arith.constant 0 : i32
    %c0_i32_0 = arith.constant 0 : i32
    return %c0_i32 : i32
  }
}

</mosaic_0001>

<bundles_post_ra>
// kernel: tpu_custom_call.1
= control target key start
LH: loop header
LB: loop body
LE: loop exit
PB: predicated region body
PF: predicated region fallthrough
CT: control target
= control target key end

     0   :  { %8 = vsyncpa [#allocation11], 0  ;;  %s903_s0 = inlined_call_operand.hbm [shape: f32[64,256], index: 0, kind: input, shape index: {}]   ;;  %s904_s1 = inlined_call_operand.vmem [shape: s32[1,64], index: 1, kind: input, shape index: {}]   ;;  %s905_s2 = inlined_call_operand.vmem [shape: f32[2,256], index: 2, kind: input, shape index: {}]   ;;  %s906_s3 = inlined_call_operand.hbm [shape: f32[1], index: 3, kind: output, shape index: {}]  }
   0x1   :  { %9 = vsyncpa [#allocation12], 0  ;;  %s786_s12 = smov [#allocation10]   ;;  %s748_s16 = scalar_lea.hbm %s903_s0, 2048 }
   0x2   :  { %s15_s13 = sshll.u32 %s786_s12, 4  ;;  %p749_p0 = scmp.ne.s32.totalorder %s903_s0, %s748_s16  ;;  %s16_s13 = int_to_ptr.vmem [resolvable:$true] %s15_s13 }
   0x3   :  { %p752_p1 = scmp.lt.u32.totalorder %s748_s16, %s903_s0 }
   0x5   :  { %p754_p2 = pnand %p752_p1, %p749_p0 }
   0x7   :  { %757 = shalt.err (!%p754_p2)
}
   0x8   :  { %s758_s21 = scalar_lea.vmem %s16_s13, 2048  ;;  %p763_p4 = scmp.lt.s32.totalorder %s16_s13, %s16_s13 }
   0x9   :  { %p759_p3 = scmp.ne.s32.totalorder %s16_s13, %s758_s21  ;;  %p764_p5 = scmp.lt.s32.totalorder %s758_s21, %s758_s21 }
   0xb   :  { %p765_p6 = por %p764_p5, %p763_p4 }
   0xd   :  { %p766_p7 = pnand %p765_p6, %p759_p3 }
   0xf   :  { %769 = shalt.err (!%p766_p7)
}
  0x10   :  { %s787_s22 = smov 256   ;;  %s788_s23 = smov 16  }
  0x11   :  { %21 = dma.hbm_to_vmem [thread:$0]  %s903_s0, 2048, %s16_s13, [#allocation11], %s787_s22, %s787_s22, %s788_s23  }
  0x12   :  { %780 = dma.done.wait [#allocation11], 2048  }
  0x13   :  { %781 = vsyncadd [#allocation11], 4294965248  ;;  %v48_v0 = vld [vmem:[%s905_s2] sm:$0xf] }
  0x14   :  { %49 = vst [vmem:[#allocation2] sm:$0xf] %v48_v0 }
  0x15   :  { %74 = vsyncadd [#allocation3], 64 }
  0x16   :  { %782 = dma.done.wait [#allocation3], 64 }
  0x17   :  { %783 = vsyncadd [#allocation3], 4294967232  ;;  %v85_v1 = vlaneseq  ;;  %v789_v2 = vmov 0.0   ;;  %v790_v3 = vmov 1983009808   ;;  %vm98_vm0 = vcmask 1024  }
  0x18   :  { %258 = vst [vmem:[#allocation8] sm:$0xf] %v789_v2  ;;  %v83_v4 = vunpack.c.l.s4 %v790_v3  ;;  %257 = vst.msk [vmem:[#allocation7] sm:$0x3] %vm98_vm0, %v789_v2  ;;  %v688_v8 = vld [vmem:[%s904_s1] ss:$0 sm:$0xff] }
  0x19   :  { %v831_v5 = vshrl.u32 %v85_v1, 7  ;;  %259 = vst.msk [vmem:[#allocation9] sm:$0x3] %vm98_vm0, %v789_v2  ;;  %vm456_vm1 = vcmask 517120   ;;  %v261_v10 = vld [vmem:[#allocation10 + $0x8] sm:$0xff]  ;;  %v263_v13 = vld [vmem:[#allocation10 + $0x18] sm:$0xff] }
  0x1a   :  { %v84_v6 = vunpack.c.0.s8 %v83_v4  ;;  %v260_v14 = vld [vmem:[#allocation10] sm:$0xff]  ;;  %v279_v15 = vmul.f32 %v261_v10, %v261_v10  ;;  %vm92_vm3 = vcmask 1041408   ;;  %v692_v21 = vpack.c.bf16 %v263_v13, %v261_v10  ;;  %v262_v22 = vld [vmem:[#allocation10 + $0x10] sm:$0xff]  ;;  %v265_v24 = vld [vmem:[#allocation10 + $0x28] sm:$0xff]  ;;  %s770_s11 = scalar_lea.hbm %s906_s3, 16 }
  0x1b   :  { %v79_v9 = vld [vmem:[#allocation2] sm:$0xf]  ;;  %vm451_vm2 = vcmp.eq.s32.totalorder %v688_v8, %v831_v5  ;;  %v278_v17 = vmul.f32 %v260_v14, %v260_v14  ;;  %v267_v25 = vld [vmem:[#allocation10 + $0x38] sm:$0xff]  ;;  %v280_v26 = vmul.f32 %v262_v22, %v262_v22  ;;  %v281_v27 = vmul.f32 %v263_v13, %v263_v13  ;;  %v264_v30 = vld [vmem:[#allocation10 + $0x20] sm:$0xff]  ;;  %p771_p8 = scmp.ne.s32.totalorder %s906_s3, %s770_s11  ;;  %p774_p9 = scmp.lt.u32.totalorder %s770_s11, %s906_s3 }
  0x1c   :  { %v838_v7 = vsub.s32 %v84_v6, %v831_v5  ;;  %v80_v11 = vmul.f32 %v79_v9, %v79_v9  ;;  %v846_v16 = vsel %vm451_vm2, 1.0, %v789_v2  ;;  %v694_v31 = vpack.c.bf16 %v262_v22, %v260_v14  ;;  %v266_v32 = vld [vmem:[#allocation10 + $0x30] sm:$0xff]  ;;  %v269_v33 = vld [vmem:[#allocation10 + $0x48] sm:$0xff]  ;;  %v271_v34 = vld [vmem:[#allocation10 + $0x58] sm:$0xff]  ;;  %693 = vmatprep.subr.bf16.mxu1 %v692_v21 }
  0x1d   :  { %v475_v18 = vsel %vm456_vm1, %v846_v16, 0.0  ;;  %v294_v23 = vadd.f32 %v279_v15, %v278_v17  ;;  %v282_v35 = vmul.f32 %v264_v30, %v264_v30  ;;  %v283_v36 = vmul.f32 %v265_v24, %v265_v24  ;;  %v268_v45 = vld [vmem:[#allocation10 + $0x40] sm:$0xff]  ;;  %v687_v46 = vld.sshfl [vmem:[#allocation2] sm:$0x33 pattern:$0x76325410]  ;;  %p776_p10 = pnand %p774_p9, %p771_p8 }
  0x1e   :  { %v107_v12 = vrot.slane %v79_v9, %v838_v7  ;;  %v88_v19 = vrot.slane %v80_v11, %v838_v7  ;;  %476 = vadd.xlane.f32.xlu0 %v475_v18  ;;  %v696_v38 = vpack.c.bf16 %v267_v25, %v265_v24  ;;  %v297_v39 = vadd.f32 %v281_v27, %v280_v26  ;;  %v270_v47 = vld [vmem:[#allocation10 + $0x50] sm:$0xff]  ;;  %v273_v49 = vld [vmem:[#allocation10 + $0x68] sm:$0xff]  ;;  %v275_v50 = vld [vmem:[#allocation10 + $0x78] sm:$0xff] }
  0x1f   :  { %295 = vadd.xlane.f32.xlu1 %v294_v23  ;;  %v284_v40 = vmul.f32 %v266_v32, %v266_v32  ;;  %v285_v42 = vmul.f32 %v267_v25, %v267_v25  ;;  %695 = vmatpush1.bf16.xpose.msra.mxu1 %v694_v31  ;;  %v698_v43 = vpack.c.bf16 %v266_v32, %v264_v30  ;;  %v272_v59 = vld [vmem:[#allocation10 + $0x60] sm:$0xff]  ;;  %v274_v60 = vld [vmem:[#allocation10 + $0x70] sm:$0xff]  ;;  %vm487_vm4 = vcmask 523264   ;;  %v474_v11 = vld [vmem:[#allocation7] sm:$0x3] }
  0x20   :  { %v108_v20 = vcombine.high %v107_v12, %v107_v12  ;;  %v89_v28 = vcombine.high %v88_v19, %v88_v19  ;;  %v93_v29 = vsel %vm92_vm3, %v88_v19, 0.0  ;;  %v700_v44 = vpack.c.bf16 %v271_v34, %v269_v33  ;;  %697 = vmatprep.subr.bf16.mxu1 %v696_v38  ;;  %v486_v32 = vld [vmem:[#allocation8] sm:$0xf] }
  0x21   :  { %v300_v48 = vadd.f32 %v283_v36, %v282_v35  ;;  %v286_v51 = vmul.f32 %v268_v45, %v268_v45  ;;  %v287_v52 = vmul.f32 %v269_v33, %v269_v33  ;;  %v303_v53 = vadd.f32 %v285_v42, %v284_v40 }
  0x22   :  { %111 = vmatprep.subr.mxu0 %v108_v20  ;;  %175 = vmatprep.mubr.f32.mxu0 %v108_v20  ;;  %v94_v37 = vsel %vm92_vm3, %v89_v28, 0.0  ;;  %v288_v54 = vmul.f32 %v270_v47, %v270_v47  ;;  %v289_v55 = vmul.f32 %v271_v34, %v271_v34  ;;  %v358_v56 = vcombine.high %v687_v46, %v687_v46 }
  0x23   :  { %112 = vmatpush1.xpose.msra.mxu0 %v107_v12  ;;  %v95_v41 = vadd.f32 %v94_v37, %v93_v29  ;;  %298 = vadd.xlane.f32.xlu1 %v297_v39  ;;  %v702_v57 = vpack.c.bf16 %v270_v47, %v268_v45  ;;  %v704_v58 = vpack.c.bf16 %v275_v50, %v273_v49  ;;  %v791_v10 = vmov 0  }
  0x24   :  { %709 = vmatprep.subr.bf16.mxu0 %v692_v21  ;;  %v306_v61 = vadd.f32 %v287_v52, %v286_v51  ;;  %v290_v62 = vmul.f32 %v272_v59, %v272_v59  ;;  %v291_v63 = vmul.f32 %v273_v49, %v273_v49  ;;  %v309_v0 = vadd.f32 %v289_v55, %v288_v54 }
  0x25   :  { %96 = vadd.xlane.f32.xlu0 %v95_v41  ;;  %v292_v3 = vmul.f32 %v274_v60, %v274_v60  ;;  %v293_v4 = vmul.f32 %v275_v50, %v275_v50  ;;  %425 = vmatprep.mubr.f32.mxu1 %v358_v56  ;;  %v706_v6 = vpack.c.bf16 %v274_v60, %v272_v59  ;;  %vm255_vm5 = vcmask 516096  }
  0x26   :  { %176 = vmatmul.mubr.f32.vlgmr.msra.gmra.mrb[0].mxu0 %v107_v12  ;;  %v312_v8 = vadd.f32 %v291_v63, %v290_v62  ;;  %738 = vset.pattern.permute.xlu0 %v791_v10  ;;  %256 = vst.msk [vmem:[#allocation6] sm:$0x1] %vm255_vm5, %v789_v2  ;;  %v792_v37 = vmov 269488144   ;;  %v215_v49 = vsub.s32 0, %v831_v5  ;;  %vm239_vm12 = vcmask 9216  }
  0x27   :  { %711 = vmatpush1.bf16.msra.mxu0 %v694_v31  ;;  %555 = vmatprep.mubr.f32.mxu0 %v789_v2  ;;  %v315_v9 = vadd.f32 %v293_v4, %v292_v3 }
  0x28   :  { %713 = vmatprep.subr.bf16.mxu0 %v696_v38  ;;  %304 = vadd.xlane.f32.xlu1 %v303_v53  ;;  %v586_v38 = vunpack.c.l.s4 %v792_v37  ;;  %v231_v37 = vand.u32 127, %v85_v1 }
  0x29   :  { %301 = vadd.xlane.f32.xlu0 %v300_v48  ;;  %699 = vmatpush1.bf16.xpose.msra.mxu1 %v698_v43 }
  0x2a   :  { %701 = vmatprep.subr.bf16.mxu1 %v700_v44  ;;  %739 = vset.pattern.permute.xlu1 %v791_v10  ;;  %v587_v39 = vunpack.c.0.s8 %v586_v38  ;;  %vm232_vm9 = vcmp.eq.s32.totalorder %v831_v5, %v231_v37 }
  0x2b   :  { %715 = vmatpush1.bf16.msra.mxu0 %v698_v43 }
  0x2c   :  { %717 = vmatprep.subr.bf16.mxu0 %v700_v44  ;;  %310 = vadd.xlane.f32.xlu1 %v309_v0  ;;  %v590_v40 = vsub.s32 %v587_v39, %v831_v5 }
  0x2d   :  { %307 = vadd.xlane.f32.xlu0 %v306_v61 }
  0x2f   :  { %719 = vmatpush1.bf16.msra.mxu0 %v702_v57 }
  0x30   :  { %721 = vmatprep.subr.bf16.mxu0 %v704_v58  ;;  %316 = vadd.xlane.f32.xlu1 %v315_v9 }
  0x31   :  { %313 = vadd.xlane.f32.xlu0 %v312_v8  ;;  %703 = vmatpush1.bf16.xpose.msra.mxu1 %v702_v57 }
  0x32   :  { %705 = vmatprep.subr.bf16.mxu1 %v704_v58 }
  0x33   :  { %723 = vmatpush1.bf16.msra.mxu0 %v706_v6 }
  0x36   :  { %690 = vmatmul.mubr.msk.f32.vlgmr.msra.gmra.mrb[2].mxu0 %vm487_vm4, %v846_v16 }
  0x39   :  { %707 = vmatpush1.bf16.xpose.msra.mxu1 %v706_v6 }
  0x40   :  { %426 = vmatmul.mubr.f32.vlgmr.msra.gmra.mrb[0].mxu1 %v687_v46  ;;  %v595_v46 = vld [vmem:[#allocation2] sm:$0xf] }
  0xab   :  { %v477_v12 = vpop.xlane.xlu0 %476 }
  0xac   :  { %v478_v13 = vadd.f32 %v477_v12, %v474_v11  ;;  %v296_v19 = vpop.xlane.xlu1 %295  ;;  %v455_v11 = vld [vmem:[#allocation6] sm:$0x1] }
  0xae   :  { %480 = vst.msk [vmem:[#allocation7] sm:$0x3] %vm98_vm0, %v478_v13 }
  0xb0   :  { %v299_v20 = vpop.xlane.xlu1 %298 }
  0xb2   :  { %v856_v14 = vpop.xlane.xlu0 %96 }
  0xb3   :  { %99 = vst.msk [vmem:[#allocation4] sm:$0x3] %vm98_vm0, %v856_v14 }
  0xb5   :  { %v860_v15 = vld [vmem:[#allocation7] sm:$0x3]  ;;  %v305_v22 = vpop.xlane.xlu1 %304 }
  0xb6   :  { %v579_v17 = vmax.f32 %v860_v15, 1.0  ;;  %v302_v21 = vpop.xlane.xlu0 %301  ;;  %vm619_vm8 = vcmp.gt.f32.partialorder %v860_v15, 1.0 }
  0xb8   :  { %583 = vperm.xlu0 %738, %v579_v17  }
  0xb9   :  { %v311_v24 = vpop.xlane.xlu1 %310 }
  0xba   :  { %v431_v18 = vld [vmem:[#allocation4] sm:$0x3]  ;;  %v308_v23 = vpop.xlane.xlu0 %307 }
  0xbb   :  { %434 = vperm.xlu1 %739, %v431_v18  }
  0xbd   :  { %v317_v28 = vpop.xlane.xlu1 %316 }
  0xbe   :  { %v314_v27 = vpop.xlane.xlu0 %313 }
  0xe4   :  { %318 = vxpose.xlu1.b32.start [1/8] (short) (narrow) %v296_v19, 8  ;;  %v481_v19 = vld [vmem:[#allocation9] sm:$0x3] }
  0xe8   :  { %319 = vxpose.xlu1.b32.cont [2/8] (short) (narrow) %v299_v20, 8 }
  0xec   :  { %320 = vxpose.xlu1.b32.cont [3/8] (short) (narrow) %v302_v21, 8 }
  0xf0   :  { %321 = vxpose.xlu1.b32.cont [4/8] (short) (narrow) %v305_v22, 8 }
  0xf4   :  { %322 = vxpose.xlu1.b32.cont [5/8] (short) (narrow) %v308_v23, 8 }
  0xf8   :  { %323 = vxpose.xlu1.b32.cont [6/8] (short) (narrow) %v311_v24, 8 }
  0xf9   :  { %v865_v25 = vpop.f32.mrb[0].mxu0 }
  0xfa   :  { %v179_v26 = vpop.f32.mrb[1].mxu0 }
  0xfc   :  { %324 = vxpose.xlu1.b32.cont [7/8] (short) (narrow) %v314_v27, 8 }
 0x100   :  { %325 = vxpose.xlu1.b32.end [8/8] (short) (narrow) %v317_v28, 8 }
 0x109   :  { %v557_v29 = vpop.f32.mrb[2].mxu0 }
 0x10a   :  { %v559_v30 = vpop.f32.mrb[3].mxu0 }
 0x10b   :  { %v564_v31 = vcombine.low %v557_v29, %v559_v30 }
 0x10d   :  { %v571_v33 = vrot.slane %v564_v31, %v838_v7 }
 0x10f   :  { %v573_v34 = vadd.f32 %v571_v33, %v486_v32 }
 0x111   :  { %574 = vst [vmem:[#allocation8] sm:$0xf] %v573_v34  ;;  %v218_v34 = vmul.f32 2.0, %v865_v25 }
 0x113   :  { %v427_v35 = vpop.f32.mrb[0].mxu1 }
 0x114   :  { %v429_v36 = vpop.f32.mrb[1].mxu1  ;;  %v442_v53 = vmul.f32 2.0, %v427_v35 }
 0x118   :  { %v580_v44 = vld [vmem:[#allocation8] sm:$0xf] }
 0x137   :  { %v584_v41 = vpop.permute.xlu0 %583 }
 0x138   :  { %v591_v42 = vrot.slane %v584_v41, %v590_v40  ;;  %v686_v40 = vsel %vm232_vm9, 1.0, %v789_v2 }
 0x139   :  { %v237_v25 = vsub.f32 1.0, %v686_v40 }
 0x13a   :  { %740 = vrcp.f32 %v591_v42  ;;  %v435_v48 = vpop.permute.xlu1 %434 }
 0x144   :  { %v741_v43 = vpop.eup %740 }
 0x145   :  { %v594_v45 = vmul.f32 %v741_v43, %v580_v44 }
 0x147   :  { %v596_v47 = vsub.f32 %v594_v45, %v595_v46 }
 0x149   :  { %v597_v50 = vmul.f32 %v596_v47, %v596_v47 }
 0x14b   :  { %v605_v55 = vrot.slane %v597_v50, %v838_v7 }
 0x14d   :  { %v606_v58 = vcombine.high %v605_v55, %v605_v55  ;;  %v610_v61 = vsel %vm92_vm3, %v605_v55, 0.0 }
 0x14f   :  { %v611_v62 = vsel %vm92_vm3, %v606_v58, 0.0 }
 0x150   :  { %v612_v3 = vadd.f32 %v611_v62, %v610_v61 }
 0x164   :  { %v334_v51 = vpop.trf.xlu1 }
 0x165   :  { %v440_v52 = vrot.slane %v334_v51, %v215_v49 }
 0x167   :  { %v441_v54 = vadd.f32 %v440_v52, %v435_v48 }
 0x169   :  { %v443_v56 = vsub.f32 %v441_v54, %v442_v53 }
 0x16b   :  { %v444_v57 = vmax.f32 %v443_v56, 1e-12 }
 0x16d   :  { %v454_v59 = vmul.f32 %v846_v16, %v444_v57 }
 0x16f   :  { %v457_v60 = vsel %vm456_vm1, %v454_v59, 0.0 }
 0x170   :  { %482 = vadd.xlane.f32.xlu0 %v457_v60  ;;  %v458_v63 = vrot.slane %v457_v60, 4 }
 0x172   :  { %v459_v0 = vadd.f32 %v458_v63, %v457_v60 }
 0x174   :  { %v460_v4 = vrot.slane %v459_v0, 2  ;;  %613 = vadd.xlane.f32.xlu0 %v612_v3 }
 0x176   :  { %v461_v6 = vadd.f32 %v460_v4, %v459_v0 }
 0x178   :  { %v462_v8 = vrot.slane %v461_v6, 1 }
 0x17a   :  { %v463_v7 = vadd.f32 %v462_v8, %v461_v6 }
 0x17c   :  { %742 = vrsqrt.f32 %v463_v7  ;;  %vm466_vm6 = vcmp.eq.f32.partialorder %v463_v7, inf  ;;  %v469_v16 = vand.u32 2147483648, %v463_v7  ;;  %vm468_vm7 = vcmp.eq.f32.partialorder %v463_v7, 0.0 }
 0x17d   :  { %744 = vrcp.f32 %v579_v17 }
 0x186   :  { %v743_v9 = vpop.eup %742 }
 0x187   :  { %v465_v10 = vmul.f32 %v743_v9, %v463_v7  ;;  %v745_v28 = vpop.eup %744 }
 0x189   :  { %v467_v12 = vsel %vm466_vm6, %v463_v7, %v465_v10 }
 0x18a   :  { %v470_v13 = vsel %vm468_vm7, %v469_v16, %v467_v12 }
 0x18b   :  { %v471_v18 = vadd.f32 %v470_v13, %v455_v11 }
 0x18d   :  { %473 = vst.msk [vmem:[#allocation6] sm:$0x1] %vm255_vm5, %v471_v18 }
 0x194   :  { %v636_v46 = vld [vmem:[#allocation6] sm:$0x1] }
 0x195   :  { %v637_v1 = vsel %vm255_vm5, %v636_v46, 0.0 }
 0x1a1   :  { %181 = vxpose.xlu0.b32.start.end [1/1] (short) (narrow) %v856_v14, 8 }
 0x1fd   :  { %v483_v20 = vpop.xlane.xlu0 %482 }
 0x1fe   :  { %v484_v21 = vadd.f32 %v483_v20, %v481_v19 }
 0x200   :  { %485 = vst.msk [vmem:[#allocation9] sm:$0x3] %vm98_vm0, %v484_v21 }
 0x201   :  { %v614_v22 = vpop.xlane.xlu0 %613 }
 0x202   :  { %v616_v23 = vmul.f32 %v614_v22, %v860_v15 }
 0x207   :  { %v615_v24 = vld [vmem:[#allocation9] sm:$0x3] }
 0x208   :  { %v617_v26 = vsub.f32 %v615_v24, %v616_v23 }
 0x20a   :  { %v618_v27 = vmax.f32 %v617_v26, 0.0 }
 0x20c   :  { %v621_v29 = vmul.f32 %v745_v28, %v618_v27 }
 0x20e   :  { %v622_v30 = vsel %vm619_vm8, %v621_v29, 0.0 }
 0x20f   :  { %v623_v31 = vsel %vm98_vm0, %v622_v30, 0.0 }
 0x210   :  { %624 = vadd.xlane.f32.xlu0 %v623_v31 }
 0x221   :  { %v197_v32 = vpop.trf.xlu0 }
 0x222   :  { %v216_v33 = vrot.slane %v197_v32, %v215_v49 }
 0x224   :  { %v217_v17 = vadd.f32 %v216_v33, %v856_v14 }
 0x226   :  { %v219_v35 = vsub.f32 %v217_v17, %v218_v34 }
 0x228   :  { %v220_v36 = vmax.f32 %v219_v35, 1e-12 }
 0x22a   :  { %746 = vrsqrt.f32 %v220_v36  ;;  %vm223_vm10 = vcmp.eq.f32.partialorder %v220_v36, inf  ;;  %v226_v15 = vand.u32 2147483648, %v220_v36  ;;  %vm225_vm11 = vcmp.eq.f32.partialorder %v220_v36, 0.0 }
 0x234   :  { %v747_v38 = vpop.eup %746 }
 0x235   :  { %v222_v39 = vmul.f32 %v747_v38, %v220_v36 }
 0x237   :  { %v224_v41 = vsel %vm223_vm10, %v220_v36, %v222_v39 }
 0x238   :  { %v227_v42 = vsel %vm225_vm11, %v226_v15, %v224_v41 }
 0x239   :  { %v235_v43 = vsub.f32 1.0, %v227_v42 }
 0x23b   :  { %v236_v44 = vmax.f32 %v235_v43, 0.0 }
 0x23d   :  { %v238_v14 = vmul.f32 %v237_v25, %v236_v44 }
 0x23f   :  { %v240_v45 = vsel %vm239_vm12, %v238_v14, 0.0 }
 0x240   :  { %241 = vadd.xlane.f32.xlu1 %v240_v45 }
 0x244   :  { %638 = vadd.xlane.f32.xlu1 %v637_v1 }
 0x29d   :  { %v625_v5 = vpop.xlane.xlu0 %624 }
 0x29e   :  { %v626_v47 = vrot.slane %v625_v5, 4 }
 0x2a0   :  { %v627_v48 = vadd.f32 %v626_v47, %v625_v5 }
 0x2a2   :  { %v628_v49 = vrot.slane %v627_v48, 2 }
 0x2a4   :  { %v629_v52 = vadd.f32 %v628_v49, %v627_v48 }
 0x2a6   :  { %v630_v58 = vrot.slane %v629_v52, 1 }
 0x2a8   :  { %v631_v63 = vadd.f32 %v630_v58, %v629_v52 }
 0x2cd   :  { %v242_v50 = vpop.xlane.xlu1 %241 }
 0x2ce   :  { %v243_v2 = vrot.slane %v242_v50, 4 }
 0x2d0   :  { %v244_v51 = vadd.f32 %v243_v2, %v242_v50 }
 0x2d1   :  { %v639_v53 = vpop.xlane.xlu1 %638 }
 0x2d2   :  { %v245_v54 = vrot.slane %v244_v51, 2  ;;  %v640_v55 = vrot.slane %v639_v53, 4 }
 0x2d4   :  { %v641_v56 = vadd.f32 %v640_v55, %v639_v53  ;;  %v246_v57 = vadd.f32 %v245_v54, %v244_v51 }
 0x2d6   :  { %v642_v59 = vrot.slane %v641_v56, 2  ;;  %v247_v60 = vrot.slane %v246_v57, 1 }
 0x2d8   :  { %v643_v61 = vadd.f32 %v642_v59, %v641_v56  ;;  %v248_v62 = vadd.f32 %v247_v60, %v246_v57 }
 0x2da   :  { %724 = vpush %v248_v62  ;;  %v644_v0 = vrot.slane %v643_v61, 1 }
 0x2db   :  { %726 = vpush %v631_v63 }
 0x2dc   :  { %v645_v3 = vadd.f32 %v644_v0, %v643_v61 }
 0x2de   :  { %728 = vpush %v645_v3 }
 0x30b   :  { %s725_s1 = spop %724 }
 0x30c   :  { %s727_s28 = spop %726  ;;  %s252_s30 = smul.f32 0.49999976, %s725_s1 }
 0x30d   :  { %s635_s29 = smul.f32 0.5, %s727_s28 }
 0x30f   :  { %s729_s4 = spop %728  ;;  %s652_s6 = smul.f32 0.1, %s635_s29 }
 0x310   :  { %s649_s5 = smul.f32 0.015625, %s729_s4 }
 0x312   :  { %s651_s7 = sadd.f32 %s649_s5, %s252_s30 }
 0x314   :  { %s653_s8 = ssub.f32 %s651_s7, %s652_s6 }
 0x316   :  { %655 = sst [smem:[#allocation13]] %s653_s8 }
 0x317   :  { %779 = shalt.err (!%p776_p10)
}
 0x318   :  { %s793_s16 = smov [#allocation13]  }
 0x319   :  { %663 = dma.smem_to_hbm %s793_s16, 16, %s906_s3, [#allocation12]  }
 0x31a   :  { %784 = dma.done.wait [#allocation12], 16  }
 0x31b   :  { %785 = vsyncadd [#allocation12], 4294967280 }
 0x31c   :  { %667 = sfence }
 0x31d   :  { %668 = vsyncpa [#allocation11], 1 }
 0x31e   :  { %669 = vsyncpa [#allocation12], 1 }
 0x31f   :  { %670 = vsyncmov [#allocation3] }
 0x322   :  { %s671_s19 = vpop.sfrf %670 }
 0x323   :  { %p691_p11 = scmp.ne.s32.totalorder %s671_s19, 0 }
 0x325   :  { %675 = shalt.err (%p691_p11)  }

</bundles_post_ra>
